<compile_context>
chip_gen: v7x
topology: tpu7x:2x2x1
jax: 0.10.0
libtpu: 0.0.40
codegen_flags: <defaults>
</compile_context>

<pallas_src>
import functools

import jax
import jax.numpy as jnp
from jax.experimental import pallas as pl
from jax.experimental.pallas import tpu as pltpu

D_IN = 512          # 512 * BasicBlock.expansion (expansion == 1 for BasicBlock)
_LANES = 128        # TPU vreg lane width
_MAX_TB = 1024      # batch-tile cap: keeps double-buffered VMEM well in budget
_MASK_VAL = -1e30   # effectively -inf for padded softmax lanes


def _fused_head_kernel(x_ref, w_ref, b_ref, o_ref, *, num_heads: int, k: int,
                       kp: int, apply_softmax: bool):
    """One grid step == one batch tile, all heads fused and lane-padded.

    x_ref: (TB, D)       feature tile
    w_ref: (D, H*KP)     fused head weights, each head zero-padded K -> KP
    b_ref: (1, H*KP)     fused head biases (padded)
    o_ref: (TB, H*KP)    lane-dense output slab for this batch tile
    """
    # Native-dtype operands to the MXU; accumulate in f32.
    logits = jnp.dot(x_ref[...], w_ref[...],
                     preferred_element_type=jnp.float32)
    logits = logits + b_ref[...].astype(jnp.float32)          # (TB, H*KP) f32

    if not apply_softmax:
        o_ref[...] = logits.astype(o_ref.dtype)
        return

    tb = logits.shape[0]
    if kp != k:
        lane = jax.lax.broadcasted_iota(jnp.int32, (tb, kp), 1)
        valid = lane < k                                      # (TB, KP)
    else:
        valid = None

    # Per-head softmax over its 128-wide padded chunk, stored directly into
    # the matching o_ref slice (no concatenate temporary).
    for h in range(num_heads):
        lg = logits[:, h * kp:(h + 1) * kp]
        if valid is not None:
            lg = jnp.where(valid, lg, _MASK_VAL)              # pad lanes -> -inf
        m = jnp.max(lg, axis=-1, keepdims=True)
        e = jnp.exp(lg - m)                                   # pad lanes -> 0
        s = jnp.sum(e, axis=-1, keepdims=True)
        r = pl.reciprocal(s, approx=True)                     # EUP slot
        r = r * (2.0 - s * r)                                 # Newton-Raphson step
        o_ref[:, h * kp:(h + 1) * kp] = (e * r).astype(o_ref.dtype)


def _num_tensorcores() -> int:
    """v7x has 2 TensorCores per chip; v5e/v6e have 1."""
    try:
        kind = jax.devices()[0].device_kind.lower()
    except Exception:
        return 1
    return 2 if "v7" in kind else 1


def _pick_batch_tile(b: int, n_cores: int) -> int:
    """Exact-divisor batch tile aiming for `n_cores` grid steps, capped.

    Single TC (v5e/v6e): one big tile (one grid step) removes per-step
    overhead.  v7x: two half-batch tiles so both TensorCores are used.
    """
    if n_cores > 1 and b % (8 * n_cores) == 0:
        target = min(_MAX_TB, b // n_cores)
    else:
        target = min(_MAX_TB, b)
    if b % target == 0 and (target % 8 == 0 or target == b):
        return target
    # Largest multiple-of-8 divisor of b that is <= target.
    for tb in range(target - target % 8, 7, -8):
        if b % tb == 0:
            return tb
    return b  # awkward batch size: single full-batch tile (full-dim block ok)


def fuse_head_params(weights, biases):
    """Hoisted one-time param fusion (perf feedback).

    weights: [H, D, K] (already W^T vs PyTorch nn.Linear); biases: [H, 1, K].
    Returns lane-padded fused params:
      w_fused: [D, H*KP], b_fused: [1, H*KP] with KP = ceil(K/128)*128.
    Column h*KP + j holds head h, class j (j < K real, j >= K zero-padded).
    """
    h, d, k = weights.shape
    kp = pl.cdiv(k, _LANES) * _LANES
    w_pad = jnp.pad(weights, ((0, 0), (0, 0), (0, kp - k)))          # [H,D,KP]
    b_pad = jnp.pad(biases.reshape(h, k), ((0, 0), (0, kp - k)))     # [H,KP]
    w_fused = jnp.transpose(w_pad, (1, 0, 2)).reshape(d, h * kp)
    b_fused = b_pad.reshape(1, h * kp)
    return w_fused, b_fused


def cluster_head_forward(x, w_fused, b_fused, *, num_heads, output_k,
                         semisup=False, kmeans_use_features=False):
    """x: [B, D]; fused params from fuse_head_params().

    Returns a list of num_heads arrays [B, output_k] (non-semisup) or a single
    [B, output_k] array (semisup), matching the PyTorch module.
    """
    if not semisup and kmeans_use_features:
        # PyTorch just returns the raw features H times — pure glue, no kernel.
        return [x for _ in range(num_heads)]

    b, d = x.shape
    hp = w_fused.shape[1]          # H * KP  (lane-padded fused width)
    kp = hp // num_heads

    tb = _pick_batch_tile(b, _num_tensorcores())
    grid = (b // tb,)

    kernel = functools.partial(_fused_head_kernel, num_heads=num_heads,
                               k=output_k, kp=kp, apply_softmax=not semisup)

    x_isz = jnp.dtype(x.dtype).itemsize
    w_isz = jnp.dtype(w_fused.dtype).itemsize
    cost = pl.CostEstimate(
        flops=2 * b * d * hp,
        transcendentals=(b * hp) if not semisup else 0,
        bytes_accessed=b * d * x_isz + d * hp * w_isz + hp * w_isz
                       + b * hp * x_isz)

    out = pl.pallas_call(
        kernel,
        out_shape=jax.ShapeDtypeStruct((b, hp), x.dtype),
        grid_spec=pltpu.PrefetchScalarGridSpec(
            num_scalar_prefetch=0,
            grid=grid,
            in_specs=[
                # batch tile of features
                pl.BlockSpec((tb, d), lambda i: (i, 0)),
                # fused weights / bias: constant block index -> resident
                pl.BlockSpec((d, hp), lambda i: (0, 0)),
                pl.BlockSpec((1, hp), lambda i: (0, 0)),
            ],
            out_specs=pl.BlockSpec((tb, hp), lambda i: (i, 0)),
        ),
        compiler_params=pltpu.CompilerParams(
            dimension_semantics=("parallel",),
            vmem_limit_bytes=32 * 1024 * 1024),
        cost_estimate=cost,
    )(x, w_fused, b_fused)

    if semisup:
        # semisup uses a dedicated single head (num_heads == 1).
        return out[:, :output_k]
    return [out[:, h * kp:h * kp + output_k] for h in range(num_heads)]


def _reference_forward(x, weights, biases, *, semisup=False):
    logits = jnp.einsum("bd,hdk->hbk", x.astype(jnp.float32),
                        weights.astype(jnp.float32)) + biases.astype(jnp.float32)
    if semisup:
        return logits[0]
    return [jax.nn.softmax(logits[i], axis=-1) for i in range(weights.shape[0])]


if __name__ == "__main__":
    # Small, deterministic setup consistent with the module:
    #   x : [batch, 512]  (512 * BasicBlock.expansion)
    #   output_k = 10, num_sub_heads = 3
    batch = 2
    output_k = 10
    num_sub_heads = 3

    key = jax.random.PRNGKey(0)
    kx, kw, kb = jax.random.split(key, 3)

    x = jax.random.normal(kx, (batch, D_IN), dtype=jnp.float32)

    # PyTorch nn.Linear default init: U(-1/sqrt(in), 1/sqrt(in)).
    bound = 1.0 / (D_IN ** 0.5)
    weights = jax.random.uniform(kw, (num_sub_heads, D_IN, output_k),
                                 minval=-bound, maxval=bound,
                                 dtype=jnp.float32)
    biases = jax.random.uniform(kb, (num_sub_heads, 1, output_k),
                                minval=-bound, maxval=bound,
                                dtype=jnp.float32)

    # Hoisted one-time param fusion (done at "init", not per forward).
    w_fused, b_fused = fuse_head_params(weights, biases)
    w_fused = jax.block_until_ready(w_fused)
    b_fused = jax.block_until_ready(b_fused)

    # Non-semisup path (list of softmax'd head outputs).
    outs = cluster_head_forward(x, w_fused, b_fused, num_heads=num_sub_heads,
                                output_k=output_k, semisup=False)
    outs = [jax.block_until_ready(o) for o in outs]
    refs = _reference_forward(x, weights, biases, semisup=False)
    for o, r in zip(outs, refs):
        assert o.shape == (batch, output_k)
        assert jnp.allclose(o, r, atol=1e-5, rtol=1e-5)
        assert jnp.allclose(jnp.sum(o, axis=-1), 1.0, atol=1e-5)

    # Semisup path (single dedicated linear head, no softmax).
    ws_fused, bs_fused = fuse_head_params(weights[:1], biases[:1])
    out_semi = jax.block_until_ready(
        cluster_head_forward(x, ws_fused, bs_fused, num_heads=1,
                             output_k=output_k, semisup=True))
    ref_semi = _reference_forward(x, weights[:1], biases[:1], semisup=True)
    assert out_semi.shape == (batch, output_k)
    assert jnp.allclose(out_semi, ref_semi, atol=1e-5, rtol=1e-5)

    # kmeans_use_features=True just echoes the features.
    feats = cluster_head_forward(x, w_fused, b_fused, num_heads=num_sub_heads,
                                 output_k=output_k, semisup=False,
                                 kmeans_use_features=True)
    assert all(f.shape == x.shape for f in feats)

    # Larger batch exercises the TensorCore-aware tiled grid path.
    big_b = 512
    xb = jax.random.normal(jax.random.PRNGKey(1), (big_b, D_IN),
                           dtype=jnp.float32)
    outs_big = cluster_head_forward(xb, w_fused, b_fused,
                                    num_heads=num_sub_heads,
                                    output_k=output_k, semisup=False)
    outs_big = [jax.block_until_ready(o) for o in outs_big]
    refs_big = _reference_forward(xb, weights, biases, semisup=False)
    for o, r in zip(outs_big, refs_big):
        assert o.shape == (big_b, output_k)
        assert jnp.allclose(o, r, atol=1e-5, rtol=1e-5)

    print("KERNEL_OK")
</pallas_src>

<mosaic_0001>
module attributes {stable_mosaic.version = 11 : i64} {
  func.func @_fused_head_kernel(%arg0: i32, %arg1: memref<2x512xf32, #tpu.memory_space<vmem>>, %arg2: memref<512x384xf32, #tpu.memory_space<vmem>>, %arg3: memref<1x384xf32, #tpu.memory_space<vmem>>, %arg4: memref<2x384xf32, #tpu.memory_space<vmem>>) attributes {dimension_semantics = [#tpu.dimension_semantics<parallel>], iteration_bounds = array<i64: 1>, scalar_prefetch = 0 : i64, scratch_operands = 0 : i64, tpu.core_type = #tpu.core_type<tc>, window_params = [{transform_indices = @transform_0, window_bounds = array<i64: 2, 512>}, {pipeline_mode = #tpu.pipeline_mode<synchronous>, transform_indices = @transform_1, window_bounds = array<i64: 512, 384>}, {pipeline_mode = #tpu.pipeline_mode<synchronous>, transform_indices = @transform_2, window_bounds = array<i64: 1, 384>}, {transform_indices = @transform_3, window_bounds = array<i64: 2, 384>}]} {
    %c0 = arith.constant 0 : index
    %c0_0 = arith.constant 0 : index
    %0 = vector.load %arg1[%c0, %c0_0] : memref<2x512xf32, #tpu.memory_space<vmem>>, vector<2x512xf32>
    %c0_1 = arith.constant 0 : index
    %c0_2 = arith.constant 0 : index
    %1 = vector.load %arg2[%c0_1, %c0_2] : memref<512x384xf32, #tpu.memory_space<vmem>>, vector<512x384xf32>
    %cst = arith.constant dense<0.000000e+00> : vector<2x384xf32>
    %2 = tpu.matmul %0, %1, %cst {dimension_numbers = #tpu.dot_dimension_numbers<[1], [0], [0], [1], [0, 0, 1, 1], [], []>} : vector<2x512xf32>, vector<512x384xf32>, vector<2x384xf32> -> vector<2x384xf32>
    %c0_3 = arith.constant 0 : index
    %c0_4 = arith.constant 0 : index
    %3 = vector.load %arg3[%c0_3, %c0_4] : memref<1x384xf32, #tpu.memory_space<vmem>>, vector<1x384xf32>
    %4 = vector.broadcast %3 : vector<1x384xf32> to vector<2x384xf32>
    %5 = arith.addf %2, %4 : vector<2x384xf32>
    %6 = tpu.iota {dimensions = array<i32: 1>} : vector<2x128xi32>
    %c10_i32 = arith.constant 10 : i32
    %7 = vector.broadcast %c10_i32 : i32 to vector<2x128xi32>
    %8 = arith.cmpi slt, %6, %7 : vector<2x128xi32>
    %9 = vector.extract_strided_slice %5 {offsets = [0, 0], sizes = [2, 128], strides = [1, 1]} : vector<2x384xf32> to vector<2x128xf32>
    %cst_5 = arith.constant -1.000000e+30 : f32
    %10 = vector.broadcast %cst_5 : f32 to vector<2x128xf32>
    %11 = arith.select %8, %9, %10 : vector<2x128xi1>, vector<2x128xf32>
    %cst_6 = arith.constant dense<0xFF800000> : vector<2xf32>
    %12 = vector.multi_reduction <maximumf>, %11, %cst_6 [1] : vector<2x128xf32> to vector<2xf32>
    %13 = vector.shape_cast %12 : vector<2xf32> to vector<2x1xf32>
    %14 = vector.broadcast %13 : vector<2x1xf32> to vector<2x128xf32>
    %15 = arith.subf %11, %14 : vector<2x128xf32>
    %16 = math.exp %15 : vector<2x128xf32>
    %cst_7 = arith.constant dense<0.000000e+00> : vector<2xf32>
    %17 = vector.multi_reduction <add>, %16, %cst_7 [1] : vector<2x128xf32> to vector<2xf32>
    %18 = vector.shape_cast %17 : vector<2xf32> to vector<2x1xf32>
    %19 = tpu.reciprocal %18 {approx = true} : vector<2x1xf32> -> vector<2x1xf32>
    %20 = arith.mulf %18, %19 : vector<2x1xf32>
    %cst_8 = arith.constant 2.000000e+00 : f32
    %21 = vector.broadcast %cst_8 : f32 to vector<2x1xf32>
    %22 = arith.subf %21, %20 : vector<2x1xf32>
    %23 = arith.mulf %19, %22 : vector<2x1xf32>
    %24 = vector.broadcast %23 : vector<2x1xf32> to vector<2x128xf32>
    %25 = arith.mulf %16, %24 : vector<2x128xf32>
    %c0_9 = arith.constant 0 : index
    %c0_10 = arith.constant 0 : index
    %26 = vector.load %arg4[%c0_9, %c0_10] : memref<2x384xf32, #tpu.memory_space<vmem>>, vector<2x128xf32>
    tpu.vector_store %arg4[%c0_9, %c0_10], %25 {strides = array<i32>} : memref<2x384xf32, #tpu.memory_space<vmem>>, vector<2x128xf32>,
    %27 = vector.extract_strided_slice %5 {offsets = [0, 128], sizes = [2, 128], strides = [1, 1]} : vector<2x384xf32> to vector<2x128xf32>
    %cst_11 = arith.constant -1.000000e+30 : f32
    %28 = vector.broadcast %cst_11 : f32 to vector<2x128xf32>
    %29 = arith.select %8, %27, %28 : vector<2x128xi1>, vector<2x128xf32>
    %cst_12 = arith.constant dense<0xFF800000> : vector<2xf32>
    %30 = vector.multi_reduction <maximumf>, %29, %cst_12 [1] : vector<2x128xf32> to vector<2xf32>
    %31 = vector.shape_cast %30 : vector<2xf32> to vector<2x1xf32>
    %32 = vector.broadcast %31 : vector<2x1xf32> to vector<2x128xf32>
    %33 = arith.subf %29, %32 : vector<2x128xf32>
    %34 = math.exp %33 : vector<2x128xf32>
    %cst_13 = arith.constant dense<0.000000e+00> : vector<2xf32>
    %35 = vector.multi_reduction <add>, %34, %cst_13 [1] : vector<2x128xf32> to vector<2xf32>
    %36 = vector.shape_cast %35 : vector<2xf32> to vector<2x1xf32>
    %37 = tpu.reciprocal %36 {approx = true} : vector<2x1xf32> -> vector<2x1xf32>
    %38 = arith.mulf %36, %37 : vector<2x1xf32>
    %cst_14 = arith.constant 2.000000e+00 : f32
    %39 = vector.broadcast %cst_14 : f32 to vector<2x1xf32>
    %40 = arith.subf %39, %38 : vector<2x1xf32>
    %41 = arith.mulf %37, %40 : vector<2x1xf32>
    %42 = vector.broadcast %41 : vector<2x1xf32> to vector<2x128xf32>
    %43 = arith.mulf %34, %42 : vector<2x128xf32>
    %c0_15 = arith.constant 0 : index
    %c128 = arith.constant 128 : index
    %44 = vector.load %arg4[%c0_15, %c128] : memref<2x384xf32, #tpu.memory_space<vmem>>, vector<2x128xf32>
    tpu.vector_store %arg4[%c0_15, %c128], %43 {strides = array<i32>} : memref<2x384xf32, #tpu.memory_space<vmem>>, vector<2x128xf32>,
    %45 = vector.extract_strided_slice %5 {offsets = [0, 256], sizes = [2, 128], strides = [1, 1]} : vector<2x384xf32> to vector<2x128xf32>
    %cst_16 = arith.constant -1.000000e+30 : f32
    %46 = vector.broadcast %cst_16 : f32 to vector<2x128xf32>
    %47 = arith.select %8, %45, %46 : vector<2x128xi1>, vector<2x128xf32>
    %cst_17 = arith.constant dense<0xFF800000> : vector<2xf32>
    %48 = vector.multi_reduction <maximumf>, %47, %cst_17 [1] : vector<2x128xf32> to vector<2xf32>
    %49 = vector.shape_cast %48 : vector<2xf32> to vector<2x1xf32>
    %50 = vector.broadcast %49 : vector<2x1xf32> to vector<2x128xf32>
    %51 = arith.subf %47, %50 : vector<2x128xf32>
    %52 = math.exp %51 : vector<2x128xf32>
    %cst_18 = arith.constant dense<0.000000e+00> : vector<2xf32>
    %53 = vector.multi_reduction <add>, %52, %cst_18 [1] : vector<2x128xf32> to vector<2xf32>
    %54 = vector.shape_cast %53 : vector<2xf32> to vector<2x1xf32>
    %55 = tpu.reciprocal %54 {approx = true} : vector<2x1xf32> -> vector<2x1xf32>
    %56 = arith.mulf %54, %55 : vector<2x1xf32>
    %cst_19 = arith.constant 2.000000e+00 : f32
    %57 = vector.broadcast %cst_19 : f32 to vector<2x1xf32>
    %58 = arith.subf %57, %56 : vector<2x1xf32>
    %59 = arith.mulf %55, %58 : vector<2x1xf32>
    %60 = vector.broadcast %59 : vector<2x1xf32> to vector<2x128xf32>
    %61 = arith.mulf %52, %60 : vector<2x128xf32>
    %c0_20 = arith.constant 0 : index
    %c256 = arith.constant 256 : index
    %62 = vector.load %arg4[%c0_20, %c256] : memref<2x384xf32, #tpu.memory_space<vmem>>, vector<2x128xf32>
    tpu.vector_store %arg4[%c0_20, %c256], %61 {strides = array<i32>} : memref<2x384xf32, #tpu.memory_space<vmem>>, vector<2x128xf32>,
    return
  }
  func.func @transform_0(%arg0: i32) -> (i32, i32) {
    %c0_i32 = arith.constant 0 : i32
    %c0_i32_0 = arith.constant 0 : i32
    return %arg0, %c0_i32 : i32, i32
  }
  func.func @transform_1(%arg0: i32) -> (i32, i32) {
    %c0_i32 = arith.constant 0 : i32
    %c0_i32_0 = arith.constant 0 : i32
    %c0_i32_1 = arith.constant 0 : i32
    return %c0_i32, %c0_i32_0 : i32, i32
  }
  func.func @transform_2(%arg0: i32) -> (i32, i32) {
    %c0_i32 = arith.constant 0 : i32
    %c0_i32_0 = arith.constant 0 : i32
    %c0_i32_1 = arith.constant 0 : i32
    return %c0_i32, %c0_i32_0 : i32, i32
  }
  func.func @transform_3(%arg0: i32) -> (i32, i32) {
    %c0_i32 = arith.constant 0 : i32
    %c0_i32_0 = arith.constant 0 : i32
    return %arg0, %c0_i32 : i32, i32
  }
}

</mosaic_0001>

<bundles_post_ra>
// kernel: tpu_custom_call.1
= control target key start
LH: loop header
LB: loop body
LE: loop exit
PB: predicated region body
PF: predicated region fallthrough
CT: control target
= control target key end

     0   :  { %8 = vsyncpa [#allocation3], 0  ;;  %s1085_s0 = inlined_call_operand.hbm [shape: f32[2,512], index: 0, kind: input, shape index: {}]   ;;  %s1086_s1 = inlined_call_operand.hbm [shape: f32[512,384], index: 1, kind: input, shape index: {}]   ;;  %s1087_s2 = inlined_call_operand.vmem [shape: f32[1,384], index: 2, kind: input, shape index: {}]   ;;  %s1088_s3 = inlined_call_operand.hbm [shape: f32[2,384], index: 3, kind: output, shape index: {}]  }
   0x1   :  { %9 = vsyncpa [#allocation6], 0 }
   0x2   :  { %10 = vsyncpa [#allocation4], 0  ;;  %s980_s12 = smov [#allocation2]   ;;  %s981_s14 = smov [#allocation5]  }
   0x3   :  { %s17_s13 = sshll.u32 %s980_s12, 4  ;;  %s26_s15 = sshll.u32 %s981_s14, 4  ;;  %s18_s13 = int_to_ptr.vmem [resolvable:$true] %s17_s13  ;;  %s1006_s15 = int_to_ptr.vmem [resolvable:$true] %s26_s15 }
   0x4   :  { %s908_s18 = scalar_lea.hbm %s1085_s0, 128 }
   0x5   :  { %p909_p0 = scmp.ne.s32.totalorder %s1085_s0, %s908_s18  ;;  %p912_p1 = scmp.lt.u32.totalorder %s908_s18, %s1085_s0 }
   0x7   :  { %p914_p2 = pnand %p912_p1, %p909_p0 }
   0x9   :  { %917 = shalt.err (!%p914_p2)
}
   0xa   :  { %s918_s23 = scalar_lea.vmem %s18_s13, 128  ;;  %p923_p4 = scmp.lt.s32.totalorder %s18_s13, %s18_s13 }
   0xb   :  { %p919_p3 = scmp.ne.s32.totalorder %s18_s13, %s918_s23  ;;  %p924_p5 = scmp.lt.s32.totalorder %s918_s23, %s918_s23 }
   0xd   :  { %p925_p6 = por %p924_p5, %p923_p4 }
   0xf   :  { %p926_p7 = pnand %p925_p6, %p919_p3 }
  0x11   :  { %929 = shalt.err (!%p926_p7)
}
  0x12   :  { %20 = dma.hbm_to_vmem [thread:$0]  %s1085_s0, 128, %s18_s13, [#allocation3]  }
  0x13   :  { %s930_s28 = scalar_lea.hbm %s1086_s1, 24576 }
  0x14   :  { %p931_p8 = scmp.ne.s32.totalorder %s1086_s1, %s930_s28  ;;  %p934_p9 = scmp.lt.u32.totalorder %s930_s28, %s1086_s1 }
  0x16   :  { %p936_p10 = pnand %p934_p9, %p931_p8 }
  0x18   :  { %939 = shalt.err (!%p936_p10)
}
  0x19   :  { %s940_s6 = scalar_lea.vmem %s1006_s15, 24576  ;;  %p945_p12 = scmp.lt.s32.totalorder %s1006_s15, %s1006_s15 }
  0x1a   :  { %p941_p11 = scmp.ne.s32.totalorder %s1006_s15, %s940_s6  ;;  %p946_p13 = scmp.lt.s32.totalorder %s940_s6, %s940_s6 }
  0x1c   :  { %p947_p0 = por %p946_p13, %p945_p12 }
  0x1e   :  { %p948_p1 = pnand %p947_p0, %p941_p11 }
  0x20   :  { %951 = shalt.err (!%p948_p1)
}
  0x21   :  { %s982_s0 = smov 384   ;;  %s983_s7 = smov 24  }
  0x22   :  { %32 = dma.hbm_to_vmem [thread:$0]  %s1086_s1, 24576, %s1006_s15, [#allocation6], %s982_s0, %s982_s0, %s983_s7  }
  0x23   :  { %974 = dma.done.wait [#allocation3], 128  }
  0x24   :  { %975 = vsyncadd [#allocation3], 4294967168 }
  0x25   :  { %976 = dma.done.wait [#allocation6], 24576  }
  0x26   :  { %977 = vsyncadd [#allocation6], 4294942720  ;;  %v43_v0 = vld [vmem:[#allocation5 + $0x8] sm:$0xff]  ;;  %v46_v1 = vld [vmem:[#allocation5 + $0x20] sm:$0xff]  ;;  %v236_v50 = vlaneseq  ;;  %v984_v51 = vmov 1983009808  }
  0x27   :  { %v92_v2 = vld [vmem:[#allocation5 + $0x190] sm:$0xff]  ;;  %v693_v3 = vpack.c.bf16 %v46_v1, %v43_v0  ;;  %v95_v4 = vld [vmem:[#allocation5 + $0x1a8] sm:$0xff]  ;;  %v42_v5 = vld [vmem:[#allocation5] sm:$0xff]  ;;  %v254_v52 = vunpack.c.l.s4 %v984_v51  ;;  %vm559_vm1 = vcmask 1041408  }
  0x28   :  { %v45_v6 = vld [vmem:[#allocation5 + $0x18] sm:$0xff]  ;;  %v821_v7 = vpack.c.bf16 %v95_v4, %v92_v2  ;;  %v44_v9 = vld [vmem:[#allocation5 + $0x10] sm:$0xff]  ;;  %v47_v10 = vld [vmem:[#allocation5 + $0x28] sm:$0xff]  ;;  %v1038_v1 = vshrl.u32 %v236_v50, 7 }
  0x29   :  { %v695_v8 = vpack.c.bf16 %v45_v6, %v42_v5  ;;  %v49_v11 = vld [vmem:[#allocation5 + $0x38] sm:$0xff]  ;;  %694 = vmatprep.subr.bf16.mxu0 %v693_v3  ;;  %v823_v12 = vpack.c.bf16 %v47_v10, %v44_v9  ;;  %v52_v13 = vld [vmem:[#allocation5 + $0x50] sm:$0xff]  ;;  %v98_v14 = vld [vmem:[#allocation5 + $0x1c0] sm:$0xff]  ;;  %v255_v2 = vunpack.c.0.s8 %v254_v52 }
  0x2a   :  { %v101_v15 = vld [vmem:[#allocation5 + $0x1d8] sm:$0xff]  ;;  %822 = vmatprep.subr.bf16.mxu1 %v821_v7  ;;  %v697_v16 = vpack.c.bf16 %v52_v13, %v49_v11  ;;  %v48_v18 = vld [vmem:[#allocation5 + $0x30] sm:$0xff]  ;;  %v51_v19 = vld [vmem:[#allocation5 + $0x48] sm:$0xff] }
  0x2b   :  { %696 = vmatpush1.bf16.msra.mxu0 %v695_v8  ;;  %v825_v17 = vpack.c.bf16 %v101_v15, %v98_v14  ;;  %v50_v20 = vld [vmem:[#allocation5 + $0x40] sm:$0xff]  ;;  %824 = vmatpush3.bf16.msra.mxu1 %v823_v12  ;;  %v699_v21 = vpack.c.bf16 %v51_v19, %v48_v18  ;;  %v53_v22 = vld [vmem:[#allocation5 + $0x58] sm:$0xff]  ;;  %v55_v23 = vld [vmem:[#allocation5 + $0x68] sm:$0xff]  ;;  %v258_v15 = vsub.s32 %v255_v2, %v1038_v1 }
  0x2c   :  { %v58_v24 = vld [vmem:[#allocation5 + $0x80] sm:$0xff]  ;;  %698 = vmatprep.subr.bf16.mxu0 %v697_v16  ;;  %v827_v25 = vpack.c.bf16 %v53_v22, %v50_v20  ;;  %v104_v27 = vld [vmem:[#allocation5 + $0x1f0] sm:$0xff]  ;;  %v107_v28 = vld [vmem:[#allocation5 + $0x208] sm:$0xff] }
  0x2d   :  { %826 = vmatprep.subr.bf16.mxu1 %v825_v17  ;;  %v701_v26 = vpack.c.bf16 %v58_v24, %v55_v23  ;;  %v54_v29 = vld [vmem:[#allocation5 + $0x60] sm:$0xff]  ;;  %v829_v30 = vpack.c.bf16 %v107_v28, %v104_v27  ;;  %v57_v31 = vld [vmem:[#allocation5 + $0x78] sm:$0xff]  ;;  %v56_v32 = vld [vmem:[#allocation5 + $0x70] sm:$0xff] }
  0x2e   :  { %v59_v33 = vld [vmem:[#allocation5 + $0x88] sm:$0xff]  ;;  %v703_v34 = vpack.c.bf16 %v57_v31, %v54_v29  ;;  %v61_v35 = vld [vmem:[#allocation5 + $0x98] sm:$0xff]  ;;  %v64_v36 = vld [vmem:[#allocation5 + $0xb0] sm:$0xff] }
  0x2f   :  { %700 = vmatpush1.bf16.msra.mxu0 %v699_v21  ;;  %v110_v37 = vld [vmem:[#allocation5 + $0x220] sm:$0xff]  ;;  %828 = vmatpush3.bf16.msra.mxu1 %v827_v25  ;;  %v831_v38 = vpack.c.bf16 %v59_v33, %v56_v32  ;;  %v705_v39 = vpack.c.bf16 %v64_v36, %v61_v35  ;;  %v113_v40 = vld [vmem:[#allocation5 + $0x238] sm:$0xff]  ;;  %v60_v41 = vld [vmem:[#allocation5 + $0x90] sm:$0xff] }
  0x30   :  { %702 = vmatprep.subr.bf16.mxu0 %v701_v26  ;;  %v63_v42 = vld [vmem:[#allocation5 + $0xa8] sm:$0xff]  ;;  %830 = vmatprep.subr.bf16.mxu1 %v829_v30  ;;  %v833_v43 = vpack.c.bf16 %v113_v40, %v110_v37  ;;  %v62_v44 = vld [vmem:[#allocation5 + $0xa0] sm:$0xff]  ;;  %v65_v45 = vld [vmem:[#allocation5 + $0xb8] sm:$0xff] }
  0x31   :  { %v67_v46 = vld [vmem:[#allocation5 + $0xc8] sm:$0xff]  ;;  %v70_v47 = vld [vmem:[#allocation5 + $0xe0] sm:$0xff]  ;;  %v116_v48 = vld [vmem:[#allocation5 + $0x250] sm:$0xff]  ;;  %v707_v53 = vpack.c.bf16 %v63_v42, %v60_v41  ;;  %v835_v54 = vpack.c.bf16 %v65_v45, %v62_v44 }
  0x32   :  { %v119_v49 = vld [vmem:[#allocation5 + $0x268] sm:$0xff]  ;;  %v709_v55 = vpack.c.bf16 %v70_v47, %v67_v46  ;;  %v66_v56 = vld [vmem:[#allocation5 + $0xc0] sm:$0xff]  ;;  %v69_v57 = vld [vmem:[#allocation5 + $0xd8] sm:$0xff] }
  0x33   :  { %704 = vmatpush1.bf16.msra.mxu0 %v703_v34  ;;  %832 = vmatpush3.bf16.msra.mxu1 %v831_v38  ;;  %v68_v58 = vld [vmem:[#allocation5 + $0xd0] sm:$0xff]  ;;  %v837_v59 = vpack.c.bf16 %v119_v49, %v116_v48  ;;  %v71_v60 = vld [vmem:[#allocation5 + $0xe8] sm:$0xff]  ;;  %v73_v61 = vld [vmem:[#allocation5 + $0xf8] sm:$0xff]  ;;  %v711_v3 = vpack.c.bf16 %v69_v57, %v66_v56 }
  0x34   :  { %706 = vmatprep.subr.bf16.mxu0 %v705_v39  ;;  %834 = vmatprep.subr.bf16.mxu1 %v833_v43  ;;  %v76_v62 = vld [vmem:[#allocation5 + $0x110] sm:$0xff]  ;;  %v122_v63 = vld [vmem:[#allocation5 + $0x280] sm:$0xff]  ;;  %v125_v0 = vld [vmem:[#allocation5 + $0x298] sm:$0xff]  ;;  %v839_v4 = vpack.c.bf16 %v71_v60, %v68_v58 }
  0x35   :  { %v713_v5 = vpack.c.bf16 %v76_v62, %v73_v61  ;;  %v72_v6 = vld [vmem:[#allocation5 + $0xf0] sm:$0xff]  ;;  %v75_v7 = vld [vmem:[#allocation5 + $0x108] sm:$0xff]  ;;  %v74_v8 = vld [vmem:[#allocation5 + $0x100] sm:$0xff]  ;;  %v841_v9 = vpack.c.bf16 %v125_v0, %v122_v63 }
  0x36   :  { %v77_v10 = vld [vmem:[#allocation5 + $0x118] sm:$0xff]  ;;  %v79_v11 = vld [vmem:[#allocation5 + $0x128] sm:$0xff]  ;;  %v82_v12 = vld [vmem:[#allocation5 + $0x140] sm:$0xff]  ;;  %v715_v16 = vpack.c.bf16 %v75_v7, %v72_v6 }
  0x37   :  { %708 = vmatpush1.bf16.msra.mxu0 %v707_v53  ;;  %836 = vmatpush3.bf16.msra.mxu1 %v835_v54  ;;  %v128_v13 = vld [vmem:[#allocation5 + $0x2b0] sm:$0xff]  ;;  %v131_v14 = vld [vmem:[#allocation5 + $0x2c8] sm:$0xff]  ;;  %v78_v17 = vld [vmem:[#allocation5 + $0x120] sm:$0xff]  ;;  %v843_v18 = vpack.c.bf16 %v77_v10, %v74_v8  ;;  %v717_v19 = vpack.c.bf16 %v82_v12, %v79_v11 }
  0x38   :  { %710 = vmatprep.subr.bf16.mxu0 %v709_v55  ;;  %838 = vmatprep.subr.bf16.mxu1 %v837_v59  ;;  %v81_v20 = vld [vmem:[#allocation5 + $0x138] sm:$0xff]  ;;  %v80_v21 = vld [vmem:[#allocation5 + $0x130] sm:$0xff]  ;;  %v83_v22 = vld [vmem:[#allocation5 + $0x148] sm:$0xff]  ;;  %v845_v23 = vpack.c.bf16 %v131_v14, %v128_v13 }
  0x39   :  { %v85_v24 = vld [vmem:[#allocation5 + $0x158] sm:$0xff]  ;;  %v88_v25 = vld [vmem:[#allocation5 + $0x170] sm:$0xff]  ;;  %v134_v27 = vld [vmem:[#allocation5 + $0x2e0] sm:$0xff]  ;;  %v719_v30 = vpack.c.bf16 %v81_v20, %v78_v17  ;;  %v847_v31 = vpack.c.bf16 %v83_v22, %v80_v21 }
  0x3a   :  { %v41_v26 = vld [vmem:[#allocation2] sm:$0xff]  ;;  %v721_v32 = vpack.c.bf16 %v88_v25, %v85_v24  ;;  %v84_v33 = vld [vmem:[#allocation5 + $0x150] sm:$0xff]  ;;  %v87_v34 = vld [vmem:[#allocation5 + $0x168] sm:$0xff] }
  0x3b   :  { %712 = vmatpush1.bf16.msra.mxu0 %v711_v3  ;;  %840 = vmatpush3.bf16.msra.mxu1 %v839_v4  ;;  %v137_v28 = vld [vmem:[#allocation5 + $0x2f8] sm:$0xff]  ;;  %v1041_v29 = vrot.slane %v41_v26, %v258_v15  ;;  %v86_v35 = vld [vmem:[#allocation5 + $0x160] sm:$0xff]  ;;  %v91_v39 = vld [vmem:[#allocation5 + $0x188] sm:$0xff]  ;;  %v252_v41 = vcombine.high %v41_v26, %v41_v26  ;;  %v723_v44 = vpack.c.bf16 %v87_v34, %v84_v33 }
  0x3c   :  { %714 = vmatprep.subr.bf16.mxu0 %v713_v5  ;;  %842 = vmatprep.subr.bf16.mxu1 %v841_v9  ;;  %v849_v37 = vpack.c.bf16 %v137_v28, %v134_v27  ;;  %v89_v38 = vld [vmem:[#allocation5 + $0x178] sm:$0xff]  ;;  %v94_v40 = vld [vmem:[#allocation5 + $0x1a0] sm:$0xff]  ;;  %v188_v42 = vld [vmem:[#allocation5 + $0x490] sm:$0xff] }
  0x3d   :  { %v267_v36 = vcombine.high %v1041_v29, %v1041_v29  ;;  %v191_v43 = vld [vmem:[#allocation5 + $0x4a8] sm:$0xff]  ;;  %v851_v45 = vpack.c.bf16 %v89_v38, %v86_v35  ;;  %v725_v46 = vpack.c.bf16 %v94_v40, %v91_v39  ;;  %v90_v47 = vld [vmem:[#allocation5 + $0x180] sm:$0xff]  ;;  %v93_v48 = vld [vmem:[#allocation5 + $0x198] sm:$0xff]  ;;  %v1045_v55 = vrot.slane %v252_v41, %v258_v15 }
  0x3e   :  { %v140_v49 = vld [vmem:[#allocation5 + $0x310] sm:$0xff]  ;;  %v853_v51 = vpack.c.bf16 %v191_v43, %v188_v42  ;;  %v143_v52 = vld [vmem:[#allocation5 + $0x328] sm:$0xff]  ;;  %v97_v53 = vld [vmem:[#allocation5 + $0x1b8] sm:$0xff]  ;;  %v727_v58 = vpack.c.bf16 %v93_v48, %v90_v47 }
  0x3f   :  { %716 = vmatpush1.bf16.msra.mxu0 %v715_v16  ;;  %844 = vmatpush3.bf16.msra.mxu1 %v843_v18  ;;  %v100_v54 = vld [vmem:[#allocation5 + $0x1d0] sm:$0xff]  ;;  %v194_v56 = vld [vmem:[#allocation5 + $0x4c0] sm:$0xff]  ;;  %v197_v57 = vld [vmem:[#allocation5 + $0x4d8] sm:$0xff]  ;;  %v855_v59 = vpack.c.bf16 %v143_v52, %v140_v49  ;;  %v1049_v5 = vcombine.high %v1045_v55, %v1045_v55 }
  0x40   :  { %718 = vmatprep.subr.bf16.mxu0 %v717_v19  ;;  %846 = vmatprep.subr.bf16.mxu1 %v845_v23  ;;  %v729_v60 = vpack.c.bf16 %v100_v54, %v97_v53  ;;  %v96_v61 = vld [vmem:[#allocation5 + $0x1b0] sm:$0xff]  ;;  %v99_v62 = vld [vmem:[#allocation5 + $0x1c8] sm:$0xff]  ;;  %v146_v63 = vld [vmem:[#allocation5 + $0x340] sm:$0xff]  ;;  %v857_v0 = vpack.c.bf16 %v197_v57, %v194_v56 }
  0x41   :  { %479 = vmatprep.mubr.f32.mxu1 %v267_v36  ;;  %337 = vmatprep.mubr.f32.mxu0 %v267_v36  ;;  %v149_v2 = vld [vmem:[#allocation5 + $0x358] sm:$0xff]  ;;  %v103_v3 = vld [vmem:[#allocation5 + $0x1e8] sm:$0xff]  ;;  %v106_v4 = vld [vmem:[#allocation5 + $0x200] sm:$0xff]  ;;  %v731_v8 = vpack.c.bf16 %v99_v62, %v96_v61 }
  0x42   :  { %v200_v6 = vld [vmem:[#allocation5 + $0x4f0] sm:$0xff]  ;;  %v203_v7 = vld [vmem:[#allocation5 + $0x508] sm:$0xff]  ;;  %v859_v9 = vpack.c.bf16 %v149_v2, %v146_v63  ;;  %v733_v10 = vpack.c.bf16 %v106_v4, %v103_v3  ;;  %v102_v11 = vld [vmem:[#allocation5 + $0x1e0] sm:$0xff] }
  0x43   :  { %720 = vmatpush1.bf16.msra.mxu0 %v719_v30  ;;  %848 = vmatpush3.bf16.msra.mxu1 %v847_v31  ;;  %v105_v12 = vld [vmem:[#allocation5 + $0x1f8] sm:$0xff]  ;;  %v152_v13 = vld [vmem:[#allocation5 + $0x370] sm:$0xff]  ;;  %v861_v14 = vpack.c.bf16 %v203_v7, %v200_v6  ;;  %v155_v15 = vld [vmem:[#allocation5 + $0x388] sm:$0xff] }
  0x44   :  { %722 = vmatprep.subr.bf16.mxu0 %v721_v32  ;;  %850 = vmatprep.subr.bf16.mxu1 %v849_v37  ;;  %v109_v16 = vld [vmem:[#allocation5 + $0x218] sm:$0xff]  ;;  %v112_v17 = vld [vmem:[#allocation5 + $0x230] sm:$0xff]  ;;  %v206_v18 = vld [vmem:[#allocation5 + $0x520] sm:$0xff]  ;;  %v735_v20 = vpack.c.bf16 %v105_v12, %v102_v11  ;;  %v863_v21 = vpack.c.bf16 %v155_v15, %v152_v13 }
  0x45   :  { %v209_v19 = vld [vmem:[#allocation5 + $0x538] sm:$0xff]  ;;  %v737_v22 = vpack.c.bf16 %v112_v17, %v109_v16  ;;  %v108_v23 = vld [vmem:[#allocation5 + $0x210] sm:$0xff]  ;;  %v111_v24 = vld [vmem:[#allocation5 + $0x228] sm:$0xff] }
  0x46   :  { %v158_v25 = vld [vmem:[#allocation5 + $0x3a0] sm:$0xff]  ;;  %v865_v26 = vpack.c.bf16 %v209_v19, %v206_v18  ;;  %v161_v27 = vld [vmem:[#allocation5 + $0x3b8] sm:$0xff]  ;;  %v115_v28 = vld [vmem:[#allocation5 + $0x248] sm:$0xff]  ;;  %v739_v33 = vpack.c.bf16 %v111_v24, %v108_v23 }
  0x47   :  { %724 = vmatpush1.bf16.msra.mxu0 %v723_v44  ;;  %852 = vmatpush3.bf16.msra.mxu1 %v851_v45  ;;  %v118_v30 = vld [vmem:[#allocation5 + $0x260] sm:$0xff]  ;;  %v212_v31 = vld [vmem:[#allocation5 + $0x550] sm:$0xff]  ;;  %v215_v32 = vld [vmem:[#allocation5 + $0x568] sm:$0xff]  ;;  %v867_v34 = vpack.c.bf16 %v161_v27, %v158_v25 }
  0x48   :  { %726 = vmatprep.subr.bf16.mxu0 %v725_v46  ;;  %854 = vmatprep.subr.bf16.mxu1 %v853_v51  ;;  %v741_v35 = vpack.c.bf16 %v118_v30, %v115_v28  ;;  %v114_v36 = vld [vmem:[#allocation5 + $0x240] sm:$0xff]  ;;  %v117_v37 = vld [vmem:[#allocation5 + $0x258] sm:$0xff]  ;;  %v164_v38 = vld [vmem:[#allocation5 + $0x3d0] sm:$0xff]  ;;  %v869_v39 = vpack.c.bf16 %v215_v32, %v212_v31 }
  0x49   :  { %v167_v40 = vld [vmem:[#allocation5 + $0x3e8] sm:$0xff]  ;;  %v121_v41 = vld [vmem:[#allocation5 + $0x278] sm:$0xff]  ;;  %v124_v42 = vld [vmem:[#allocation5 + $0x290] sm:$0xff]  ;;  %v743_v45 = vpack.c.bf16 %v117_v37, %v114_v36 }
  0x4a   :  { %480 = vmatmul.mubr.f32.vlgmr.msra.gmra.mrb[0].mxu1 %v1041_v29  ;;  %v218_v43 = vld [vmem:[#allocation5 + $0x580] sm:$0xff]  ;;  %v221_v44 = vld [vmem:[#allocation5 + $0x598] sm:$0xff]  ;;  %v871_v46 = vpack.c.bf16 %v167_v40, %v164_v38  ;;  %v745_v47 = vpack.c.bf16 %v124_v42, %v121_v41  ;;  %v120_v48 = vld [vmem:[#allocation5 + $0x270] sm:$0xff] }
  0x4b   :  { %728 = vmatpush1.bf16.msra.mxu0 %v727_v58  ;;  %856 = vmatpush3.bf16.msra.mxu1 %v855_v59  ;;  %v123_v49 = vld [vmem:[#allocation5 + $0x288] sm:$0xff]  ;;  %v170_v51 = vld [vmem:[#allocation5 + $0x400] sm:$0xff]  ;;  %v873_v52 = vpack.c.bf16 %v221_v44, %v218_v43  ;;  %v173_v53 = vld [vmem:[#allocation5 + $0x418] sm:$0xff] }
  0x4c   :  { %730 = vmatprep.subr.bf16.mxu0 %v729_v60  ;;  %858 = vmatprep.subr.bf16.mxu1 %v857_v0  ;;  %v127_v54 = vld [vmem:[#allocation5 + $0x2a8] sm:$0xff]  ;;  %v130_v56 = vld [vmem:[#allocation5 + $0x2c0] sm:$0xff]  ;;  %v224_v57 = vld [vmem:[#allocation5 + $0x5b0] sm:$0xff]  ;;  %v747_v59 = vpack.c.bf16 %v123_v49, %v120_v48  ;;  %v875_v60 = vpack.c.bf16 %v173_v53, %v170_v51 }
  0x4d   :  { %549 = vmatprep.mubr.f32.mxu1 %v1049_v5  ;;  %v227_v58 = vld [vmem:[#allocation5 + $0x5c8] sm:$0xff]  ;;  %v749_v61 = vpack.c.bf16 %v130_v56, %v127_v54  ;;  %v126_v62 = vld [vmem:[#allocation5 + $0x2a0] sm:$0xff]  ;;  %v129_v63 = vld [vmem:[#allocation5 + $0x2b8] sm:$0xff] }
  0x4e   :  { %v176_v0 = vld [vmem:[#allocation5 + $0x430] sm:$0xff]  ;;  %v877_v2 = vpack.c.bf16 %v227_v58, %v224_v57  ;;  %v179_v3 = vld [vmem:[#allocation5 + $0x448] sm:$0xff]  ;;  %v133_v4 = vld [vmem:[#allocation5 + $0x2d8] sm:$0xff] }
  0x4f   :  { %732 = vmatpush1.bf16.msra.mxu0 %v731_v8  ;;  %860 = vmatpush3.bf16.msra.mxu1 %v859_v9  ;;  %v136_v6 = vld [vmem:[#allocation5 + $0x2f0] sm:$0xff]  ;;  %v230_v7 = vld [vmem:[#allocation5 + $0x5e0] sm:$0xff]  ;;  %v233_v8 = vld [vmem:[#allocation5 + $0x5f8] sm:$0xff]  ;;  %v751_v9 = vpack.c.bf16 %v129_v63, %v126_v62 }
  0x50   :  { %734 = vmatprep.subr.bf16.mxu0 %v733_v10  ;;  %862 = vmatprep.subr.bf16.mxu1 %v861_v14  ;;  %v879_v10 = vpack.c.bf16 %v179_v3, %v176_v0  ;;  %v753_v11 = vpack.c.bf16 %v136_v6, %v133_v4  ;;  %v132_v12 = vld [vmem:[#allocation5 + $0x2d0] sm:$0xff]  ;;  %v135_v13 = vld [vmem:[#allocation5 + $0x2e8] sm:$0xff]  ;;  %v182_v14 = vld [vmem:[#allocation5 + $0x460] sm:$0xff]  ;;  %v881_v15 = vpack.c.bf16 %v233_v8, %v230_v7 }
  0x51   :  { %v185_v16 = vld [vmem:[#allocation5 + $0x478] sm:$0xff]  ;;  %v139_v17 = vld [vmem:[#allocation5 + $0x308] sm:$0xff]  ;;  %v142_v18 = vld [vmem:[#allocation5 + $0x320] sm:$0xff]  ;;  %v755_v19 = vpack.c.bf16 %v135_v13, %v132_v12 }
  0x52   :  { %v141_v23 = vld [vmem:[#allocation5 + $0x318] sm:$0xff]  ;;  %v148_v25 = vld [vmem:[#allocation5 + $0x350] sm:$0xff]  ;;  %v147_v30 = vld [vmem:[#allocation5 + $0x348] sm:$0xff] }
  0x53   :  { %736 = vmatpush1.bf16.msra.mxu0 %v735_v20  ;;  %864 = vmatpush3.bf16.msra.mxu1 %v863_v21  ;;  %v883_v20 = vpack.c.bf16 %v185_v16, %v182_v14  ;;  %v757_v21 = vpack.c.bf16 %v142_v18, %v139_v17  ;;  %v145_v24 = vld [vmem:[#allocation5 + $0x338] sm:$0xff]  ;;  %v144_v28 = vld [vmem:[#allocation5 + $0x330] sm:$0xff]  ;;  %v151_v31 = vld [vmem:[#allocation5 + $0x368] sm:$0xff] }
  0x54   :  { %738 = vmatprep.subr.bf16.mxu0 %v737_v22  ;;  %866 = vmatprep.subr.bf16.mxu1 %v865_v26  ;;  %v138_v22 = vld [vmem:[#allocation5 + $0x300] sm:$0xff]  ;;  %v761_v27 = vpack.c.bf16 %v148_v25, %v145_v24  ;;  %v153_v36 = vld [vmem:[#allocation5 + $0x378] sm:$0xff]  ;;  %v160_v38 = vld [vmem:[#allocation5 + $0x3b0] sm:$0xff] }
  0x55   :  { %v759_v26 = vpack.c.bf16 %v141_v23, %v138_v22  ;;  %v154_v32 = vld [vmem:[#allocation5 + $0x380] sm:$0xff]  ;;  %v157_v37 = vld [vmem:[#allocation5 + $0x398] sm:$0xff]  ;;  %v156_v41 = vld [vmem:[#allocation5 + $0x390] sm:$0xff] }
  0x56   :  { %v769_v40 = vpack.c.bf16 %v160_v38, %v157_v37  ;;  %v159_v42 = vld [vmem:[#allocation5 + $0x3a8] sm:$0xff]  ;;  %v169_v48 = vld [vmem:[#allocation5 + $0x3f8] sm:$0xff]  ;;  %v172_v49 = vld [vmem:[#allocation5 + $0x410] sm:$0xff] }
  0x57   :  { %740 = vmatpush1.bf16.msra.mxu0 %v739_v33  ;;  %868 = vmatpush3.bf16.msra.mxu1 %v867_v34  ;;  %v763_v33 = vpack.c.bf16 %v147_v30, %v144_v28  ;;  %v765_v34 = vpack.c.bf16 %v154_v32, %v151_v31  ;;  %v163_v43 = vld [vmem:[#allocation5 + $0x3c8] sm:$0xff]  ;;  %v771_v44 = vpack.c.bf16 %v159_v42, %v156_v41  ;;  %v178_v56 = vld [vmem:[#allocation5 + $0x440] sm:$0xff]  ;;  %v184_v62 = vld [vmem:[#allocation5 + $0x470] sm:$0xff] }
  0x58   :  { %742 = vmatprep.subr.bf16.mxu0 %v741_v35  ;;  %870 = vmatprep.subr.bf16.mxu1 %v869_v39  ;;  %v150_v35 = vld [vmem:[#allocation5 + $0x360] sm:$0xff]  ;;  %v777_v51 = vpack.c.bf16 %v172_v49, %v169_v48  ;;  %v171_v53 = vld [vmem:[#allocation5 + $0x408] sm:$0xff]  ;;  %v196_v12 = vld [vmem:[#allocation5 + $0x4d0] sm:$0xff] }
  0x59   :  { %v767_v39 = vpack.c.bf16 %v153_v36, %v150_v35  ;;  %v175_v54 = vld [vmem:[#allocation5 + $0x428] sm:$0xff]  ;;  %v190_v6 = vld [vmem:[#allocation5 + $0x4a0] sm:$0xff]  ;;  %v201_v22 = vld [vmem:[#allocation5 + $0x4f8] sm:$0xff] }
  0x5a   :  { %v781_v58 = vpack.c.bf16 %v178_v56, %v175_v54  ;;  %v183_v3 = vld [vmem:[#allocation5 + $0x468] sm:$0xff]  ;;  %v202_v18 = vld [vmem:[#allocation5 + $0x500] sm:$0xff]  ;;  %v205_v23 = vld [vmem:[#allocation5 + $0x518] sm:$0xff] }
  0x5b   :  { %744 = vmatpush1.bf16.msra.mxu0 %v743_v45  ;;  %872 = vmatpush3.bf16.msra.mxu1 %v871_v46  ;;  %v162_v46 = vld [vmem:[#allocation5 + $0x3c0] sm:$0xff]  ;;  %v187_v4 = vld [vmem:[#allocation5 + $0x488] sm:$0xff]  ;;  %v208_v24 = vld [vmem:[#allocation5 + $0x530] sm:$0xff] }
  0x5c   :  { %746 = vmatprep.subr.bf16.mxu0 %v745_v47  ;;  %874 = vmatprep.subr.bf16.mxu1 %v873_v52  ;;  %v165_v47 = vld [vmem:[#allocation5 + $0x3d8] sm:$0xff]  ;;  %v168_v52 = vld [vmem:[#allocation5 + $0x3f0] sm:$0xff]  ;;  %v789_v8 = vpack.c.bf16 %v190_v6, %v187_v4  ;;  %v195_v16 = vld [vmem:[#allocation5 + $0x4c8] sm:$0xff]  ;;  %v238_v6 = vsub.s32 0, %v1038_v1 }
  0x5d   :  { %v779_v57 = vpack.c.bf16 %v171_v53, %v168_v52  ;;  %v199_v17 = vld [vmem:[#allocation5 + $0x4e8] sm:$0xff]  ;;  %v214_v31 = vld [vmem:[#allocation5 + $0x560] sm:$0xff]  ;;  %v213_v35 = vld [vmem:[#allocation5 + $0x558] sm:$0xff] }
  0x5e   :  { %v207_v28 = vld [vmem:[#allocation5 + $0x528] sm:$0xff]  ;;  %v217_v36 = vld [vmem:[#allocation5 + $0x578] sm:$0xff]  ;;  %v220_v37 = vld [vmem:[#allocation5 + $0x590] sm:$0xff] }
  0x5f   :  { %748 = vmatpush1.bf16.msra.mxu0 %v747_v59  ;;  %876 = vmatpush3.bf16.msra.mxu1 %v875_v60  ;;  %v174_v59 = vld [vmem:[#allocation5 + $0x420] sm:$0xff]  ;;  %v177_v60 = vld [vmem:[#allocation5 + $0x438] sm:$0xff]  ;;  %v211_v30 = vld [vmem:[#allocation5 + $0x548] sm:$0xff] }
  0x60   :  { %750 = vmatprep.subr.bf16.mxu0 %v749_v61  ;;  %878 = vmatprep.subr.bf16.mxu1 %v877_v2  ;;  %v181_v61 = vld [vmem:[#allocation5 + $0x458] sm:$0xff]  ;;  %v783_v63 = vpack.c.bf16 %v177_v60, %v174_v59  ;;  %v180_v2 = vld [vmem:[#allocation5 + $0x450] sm:$0xff]  ;;  %v219_v41 = vld [vmem:[#allocation5 + $0x588] sm:$0xff] }
  0x61   :  { %v785_v0 = vpack.c.bf16 %v184_v62, %v181_v61  ;;  %v787_v7 = vpack.c.bf16 %v183_v3, %v180_v2  ;;  %v223_v42 = vld [vmem:[#allocation5 + $0x5a8] sm:$0xff]  ;;  %v232_v48 = vld [vmem:[#allocation5 + $0x5f0] sm:$0xff]  ;;  %v234_v59 = vld [vmem:[%s1087_s2] sm:$0x7]  ;;  %v556_v61 = vand.u32 127, %v236_v50  ;;  %s985_s2 = smov [#allocation7]  }
  0x62   :  { %v231_v52 = vld [vmem:[#allocation5 + $0x5e8] sm:$0xff]  ;;  %s613_s11 = sshll.u32 %s985_s2, 4  ;;  %s614_s11 = int_to_ptr.vmem [resolvable:$true] %s613_s11 }
  0x63   :  { %752 = vmatpush1.bf16.msra.mxu0 %v751_v9  ;;  %880 = vmatpush3.bf16.msra.mxu1 %v879_v10  ;;  %v186_v9 = vld [vmem:[#allocation5 + $0x480] sm:$0xff]  ;;  %v189_v10 = vld [vmem:[#allocation5 + $0x498] sm:$0xff]  ;;  %vm557_vm0 = vcmp.lt.s32.totalorder %v556_v61, 10  ;;  %s952_s12 = scalar_lea.vmem %s614_s11, 96  ;;  %p957_p3 = scmp.lt.s32.totalorder %s614_s11, %s614_s11 }
  0x64   :  { %754 = vmatprep.subr.bf16.mxu0 %v753_v11  ;;  %882 = vmatprep.subr.bf16.mxu1 %v881_v15  ;;  %v193_v11 = vld [vmem:[#allocation5 + $0x4b8] sm:$0xff]  ;;  %v791_v13 = vpack.c.bf16 %v189_v10, %v186_v9  ;;  %v192_v15 = vld [vmem:[#allocation5 + $0x4b0] sm:$0xff]  ;;  %p953_p2 = scmp.ne.s32.totalorder %s614_s11, %s952_s12  ;;  %p958_p4 = scmp.lt.s32.totalorder %s952_s12, %s952_s12 }
  0x65   :  { %v793_v14 = vpack.c.bf16 %v196_v12, %v193_v11 }
  0x66   :  { %p959_p5 = por %p958_p4, %p957_p3 }
  0x67   :  { %756 = vmatpush1.bf16.msra.mxu0 %v755_v19  ;;  %884 = vmatpush3.bf16.msra.mxu1 %v883_v20  ;;  %v795_v19 = vpack.c.bf16 %v195_v16, %v192_v15  ;;  %v797_v20 = vpack.c.bf16 %v202_v18, %v199_v17 }
  0x68   :  { %758 = vmatprep.subr.bf16.mxu0 %v757_v21  ;;  %v198_v21 = vld [vmem:[#allocation5 + $0x4e0] sm:$0xff]  ;;  %p960_p6 = pnand %p959_p5, %p953_p2 }
  0x69   :  { %v799_v25 = vpack.c.bf16 %v201_v22, %v198_v21 }
  0x6a   :  { %338 = vmatmul.mubr.f32.vlgmr.msra.gmra.mrb[0].mxu0 %v1041_v29  ;;  %550 = vmatmul.mubr.f32.vlgmr.msra.gmra.mrb[2].mxu1 %v1045_v55  ;;  %v166_v29 = vld [vmem:[#allocation5 + $0x3e0] sm:$0xff] }
  0x6b   :  { %760 = vmatpush1.bf16.msra.mxu0 %v759_v26  ;;  %408 = vmatprep.mubr.f32.mxu0 %v1049_v5  ;;  %v773_v45 = vpack.c.bf16 %v166_v29, %v163_v43  ;;  %v775_v5 = vpack.c.bf16 %v165_v47, %v162_v46  ;;  %v801_v26 = vpack.c.bf16 %v208_v24, %v205_v23  ;;  %v226_v43 = vld [vmem:[#allocation5 + $0x5c0] sm:$0xff]  ;;  %v225_v46 = vld [vmem:[#allocation5 + $0x5b8] sm:$0xff] }
  0x6c   :  { %762 = vmatprep.subr.bf16.mxu0 %v761_v27  ;;  %v204_v27 = vld [vmem:[#allocation5 + $0x510] sm:$0xff]  ;;  %v229_v47 = vld [vmem:[#allocation5 + $0x5d8] sm:$0xff] }
  0x6d   :  { %v803_v32 = vpack.c.bf16 %v207_v28, %v204_v27 }
  0x6f   :  { %764 = vmatpush1.bf16.msra.mxu0 %v763_v33  ;;  %v805_v33 = vpack.c.bf16 %v214_v31, %v211_v30 }
  0x70   :  { %766 = vmatprep.subr.bf16.mxu0 %v765_v34  ;;  %v210_v34 = vld [vmem:[#allocation5 + $0x540] sm:$0xff] }
  0x71   :  { %v807_v38 = vpack.c.bf16 %v213_v35, %v210_v34 }
  0x73   :  { %768 = vmatpush1.bf16.msra.mxu0 %v767_v39  ;;  %v809_v39 = vpack.c.bf16 %v220_v37, %v217_v36 }
  0x74   :  { %770 = vmatprep.subr.bf16.mxu0 %v769_v40  ;;  %v216_v40 = vld [vmem:[#allocation5 + $0x570] sm:$0xff] }
  0x75   :  { %v811_v29 = vpack.c.bf16 %v219_v41, %v216_v40 }
  0x77   :  { %772 = vmatpush1.bf16.msra.mxu0 %v771_v44  ;;  %v813_v44 = vpack.c.bf16 %v226_v43, %v223_v42 }
  0x78   :  { %774 = vmatprep.subr.bf16.mxu0 %v773_v45  ;;  %v222_v45 = vld [vmem:[#allocation5 + $0x5a0] sm:$0xff] }
  0x79   :  { %v815_v49 = vpack.c.bf16 %v225_v46, %v222_v45 }
  0x7b   :  { %776 = vmatpush1.bf16.msra.mxu0 %v775_v5  ;;  %v817_v5 = vpack.c.bf16 %v232_v48, %v229_v47 }
  0x7c   :  { %778 = vmatprep.subr.bf16.mxu0 %v777_v51  ;;  %v228_v51 = vld [vmem:[#allocation5 + $0x5d0] sm:$0xff] }
  0x7d   :  { %v819_v53 = vpack.c.bf16 %v231_v52, %v228_v51 }
  0x7f   :  { %780 = vmatpush1.bf16.msra.mxu0 %v779_v57 }
  0x80   :  { %782 = vmatprep.subr.bf16.mxu0 %v781_v58  ;;  %v246_v58 = vsub.s32 2, %v1038_v1 }
  0x82   :  { %v247_v60 = vrot.slane %v234_v59, %v246_v58 }
  0x83   :  { %784 = vmatpush1.bf16.msra.mxu0 %v783_v63 }
  0x84   :  { %786 = vmatprep.subr.bf16.mxu0 %v785_v0 }
  0x87   :  { %788 = vmatpush1.bf16.msra.mxu0 %v787_v7  ;;  %v242_v7 = vsub.s32 1, %v1038_v1 }
  0x88   :  { %790 = vmatprep.subr.bf16.mxu0 %v789_v8  ;;  %v239_v8 = vrot.slane %v234_v59, %v238_v6 }
  0x89   :  { %v243_v9 = vrot.slane %v234_v59, %v242_v7 }
  0x8b   :  { %792 = vmatpush1.bf16.msra.mxu0 %v791_v13 }
  0x8c   :  { %794 = vmatprep.subr.bf16.mxu0 %v793_v14 }
  0x8f   :  { %796 = vmatpush1.bf16.msra.mxu0 %v795_v19 }
  0x90   :  { %798 = vmatprep.subr.bf16.mxu0 %v797_v20 }
  0x93   :  { %800 = vmatpush1.bf16.msra.mxu0 %v799_v25 }
  0x94   :  { %802 = vmatprep.subr.bf16.mxu0 %v801_v26 }
  0x97   :  { %804 = vmatpush1.bf16.msra.mxu0 %v803_v32 }
  0x98   :  { %806 = vmatprep.subr.bf16.mxu0 %v805_v33 }
  0x9b   :  { %808 = vmatpush1.bf16.msra.mxu0 %v807_v38 }
  0x9c   :  { %810 = vmatprep.subr.bf16.mxu0 %v809_v39 }
  0x9f   :  { %812 = vmatpush1.bf16.msra.mxu0 %v811_v29 }
  0xa0   :  { %814 = vmatprep.subr.bf16.mxu0 %v813_v44 }
  0xa3   :  { %816 = vmatpush1.bf16.msra.mxu0 %v815_v49 }
  0xa4   :  { %818 = vmatprep.subr.bf16.mxu0 %v817_v5 }
  0xa7   :  { %820 = vmatpush1.bf16.msra.mxu0 %v819_v53 }
  0xaa   :  { %409 = vmatmul.mubr.f32.vlgmr.msra.gmra.mrb[0].mxu0 %v1045_v55 }
 0x11d   :  { %v655_v54 = vpop.f32.mrb[0].mxu1 }
 0x11e   :  { %v656_v56 = vpop.f32.mrb[1].mxu1 }
 0x11f   :  { %v657_v57 = vadd.f32 %v656_v56, %v655_v54 }
 0x121   :  { %v482_v62 = vadd.f32 %v657_v57, %v247_v60 }
 0x13d   :  { %v690_v63 = vpop.f32.mrb[2].mxu1 }
 0x13e   :  { %v691_v0 = vpop.f32.mrb[3].mxu1 }
 0x13f   :  { %v692_v2 = vadd.f32 %v691_v0, %v690_v63 }
 0x141   :  { %v552_v3 = vadd.f32 %v692_v2, %v482_v62 }
 0x143   :  { %v591_v55 = vsel %vm557_vm0, %v552_v3, -1e+30 }
 0x144   :  { %v592_v4 = vsel %vm559_vm1, %v591_v55, -inf }
 0x145   :  { %593 = vmax.xlane.f32.xlu1 %v592_v4 }
 0x17d   :  { %v410_v10 = vpop.f32.mrb[0].mxu0 }
 0x17e   :  { %v885_v50 = vadd.f32 %v410_v10, %v239_v8  ;;  %v412_v11 = vpop.f32.mrb[1].mxu0 }
 0x17f   :  { %v886_v12 = vadd.f32 %v412_v11, %v243_v9 }
 0x180   :  { %v558_v13 = vsel %vm557_vm0, %v885_v50, -1e+30 }
 0x181   :  { %v560_v14 = vsel %vm559_vm1, %v558_v13, -inf  ;;  %v575_v15 = vsel %vm557_vm0, %v886_v12, -1e+30 }
 0x182   :  { %561 = vmax.xlane.f32.xlu0 %v560_v14  ;;  %v576_v16 = vsel %vm559_vm1, %v575_v15, -inf }
 0x186   :  { %577 = vmax.xlane.f32.xlu0 %v576_v16 }
 0x1d2   :  { %v594_v17 = vpop.xlane.xlu1 %593 }
 0x1d3   :  { %v595_v18 = vsub.f32 %v591_v55, %v594_v17 }
 0x1d5   :  { %v596_v20 = vmul.f32 1.442695, %v595_v18 }
 0x20f   :  { %v562_v19 = vpop.xlane.xlu0 %561 }
 0x210   :  { %v563_v1 = vsub.f32 %v558_v13, %v562_v19 }
 0x212   :  { %v564_v21 = vmul.f32 1.442695, %v563_v1 }
 0x213   :  { %v578_v22 = vpop.xlane.xlu0 %577 }
 0x214   :  { %896 = vpow2.f32 %v564_v21  ;;  %v579_v23 = vsub.f32 %v575_v15, %v578_v22 }
 0x215   :  { %898 = vpow2.f32 %v596_v20 }
 0x216   :  { %v580_v24 = vmul.f32 1.442695, %v579_v23 }
 0x218   :  { %900 = vpow2.f32 %v580_v24 }
 0x21e   :  { %v897_v25 = vpop.eup %896 }
 0x21f   :  { %v566_v26 = vsel %vm559_vm1, %v897_v25, 0.0  ;;  %v899_v27 = vpop.eup %898 }
 0x220   :  { %567 = vadd.xlane.f32.xlu1 %v566_v26  ;;  %v598_v30 = vsel %vm559_vm1, %v899_v27, 0.0 }
 0x222   :  { %v901_v28 = vpop.eup %900 }
 0x223   :  { %v582_v31 = vsel %vm559_vm1, %v901_v28, 0.0 }
 0x224   :  { %599 = vadd.xlane.f32.xlu1 %v598_v30  ;;  %583 = vadd.xlane.f32.xlu0 %v582_v31 }
 0x2ad   :  { %v568_v32 = vpop.xlane.xlu1 %567 }
 0x2ae   :  { %902 = vrcp.f32 %v568_v32 }
 0x2b1   :  { %v600_v33 = vpop.xlane.xlu1 %599  ;;  %v584_v34 = vpop.xlane.xlu0 %583 }
 0x2b2   :  { %904 = vrcp.f32 %v600_v33 }
 0x2b3   :  { %906 = vrcp.f32 %v584_v34 }
 0x2b8   :  { %v903_v35 = vpop.eup %902 }
 0x2b9   :  { %v570_v36 = vmul.f32 %v903_v35, %v568_v32 }
 0x2bb   :  { %v571_v37 = vsub.f32 2.0, %v570_v36 }
 0x2bc   :  { %v905_v38 = vpop.eup %904 }
 0x2bd   :  { %v907_v39 = vpop.eup %906  ;;  %v572_v40 = vmul.f32 %v903_v35, %v571_v37  ;;  %v602_v41 = vmul.f32 %v905_v38, %v600_v33 }
 0x2be   :  { %v586_v42 = vmul.f32 %v907_v39, %v584_v34 }
 0x2bf   :  { %v573_v43 = vmul.f32 %v897_v25, %v572_v40  ;;  %v603_v29 = vsub.f32 2.0, %v602_v41 }
 0x2c0   :  { %v587_v44 = vsub.f32 2.0, %v586_v42 }
 0x2c1   :  { %574 = vst [vmem:[#allocation7] sm:$0x3] %v573_v43  ;;  %v604_v45 = vmul.f32 %v905_v38, %v603_v29 }
 0x2c2   :  { %v588_v46 = vmul.f32 %v907_v39, %v587_v44 }
 0x2c3   :  { %v605_v47 = vmul.f32 %v899_v27, %v604_v45 }
 0x2c4   :  { %v589_v48 = vmul.f32 %v901_v28, %v588_v46 }
 0x2c5   :  { %606 = vst [vmem:[#allocation7 + $0x4] sm:$0x3] %v605_v47 }
 0x2c6   :  { %590 = vst [vmem:[#allocation7 + $0x2] sm:$0x3] %v589_v48 }
 0x2c7   :  { %963 = shalt.err (!%p960_p6)
}
 0x2c8   :  { %s964_s15 = scalar_lea.hbm %s1088_s3, 96 }
 0x2c9   :  { %p965_p7 = scmp.ne.s32.totalorder %s1088_s3, %s964_s15  ;;  %p968_p8 = scmp.lt.u32.totalorder %s964_s15, %s1088_s3 }
 0x2cb   :  { %p970_p9 = pnand %p968_p8, %p965_p7 }
 0x2cd   :  { %973 = shalt.err (!%p970_p9)
}
 0x2ce   :  { %616 = dma.vmem_to_hbm [thread:$0]  %s614_s11, 96, %s1088_s3, [#allocation4]  }
 0x2cf   :  { %978 = dma.done.wait [#allocation4], 96  }
 0x2d0   :  { %979 = vsyncadd [#allocation4], 4294967200 }
 0x2d1   :  { %620 = vsyncpa [#allocation3], 1 }
 0x2d2   :  { %621 = vsyncpa [#allocation6], 1 }
 0x2d3   :  { %622 = vsyncpa [#allocation4], 1 }

</bundles_post_ra>
